<compile_context>
chip_gen: v6e
topology: v6e:2x2x1
jax: 0.10.0
libtpu: 0.0.40
codegen_flags: <defaults>
</compile_context>

<pallas_src>
import functools

import jax
import jax.numpy as jnp
from jax.experimental import pallas as pl
from jax.experimental.pallas import tpu as pltpu

EPS = 1e-5
NEG_SLOPE = 0.15


def _roll_lanes(v, shift, n_lanes):
    """Circular roll along the lane axis: out[:, p] = in[:, (p - shift) % n].

    Same semantics as jnp.roll(v, shift, axis=-1), but lowered to a single XLU
    lane rotation (vector-extended slot) so it costs no vld/vst/VPU slots.
    """
    shift = shift % n_lanes
    if shift == 0:
        return v
    return pltpu.roll(v, shift, axis=1)


def _resnet_block2_kernel(x_ref, w1_ref, w2_ref, b1_ref, b2_ref, out_ref,
                          patches_ref, *, H, W, B):
    """Processes B images per grid step.

    x_ref       : (B, Cp, H*W) f32   channels on sublanes, pixels on lanes
    w{1,2}_ref  : (Cp, 9*Cp)   bf16  packed conv weights (pre-cast in wrapper)
    b{1,2}_ref  : (Cp, 1)      f32   conv biases
    out_ref     : (B, Cp, H*W) f32
    patches_ref : (9*Cp, B*H*W) f32  VMEM scratch, reused by both convs
    """
    Cp = x_ref.shape[1]
    HW = H * W

    # Reflection-pad boundary masks (shared by both convs and all B images).
    # W=16 is a power of two, so `% W` lowers to an AND; for general W these
    # masks should be precomputed on the host and passed in instead.
    lane = jax.lax.broadcasted_iota(jnp.int32, (Cp, HW), 1)
    col = lane % W
    col_first = col == 0
    col_last = col == W - 1
    row_first = lane < W
    row_last = lane >= (H - 1) * W

    def build_patches(get_img):
        # Write the 9 reflect-padded shifted taps of each image straight into
        # the shared VMEM scratch: sublane-aligned Cp-row blocks, lane-aligned
        # per-image HW-column blocks.  No list + concat copies; rolls never
        # cross image boundaries because taps are built per image.
        for b in range(B):
            img = get_img(b)                                    # (Cp, HW) f32
            up = _roll_lanes(img, W, HW)                        # row h-1
            down = _roll_lanes(img, -W, HW)                     # row h+1
            v_m1 = jnp.where(row_first, down, up)               # ky=0, reflected
            v_p1 = jnp.where(row_last, up, down)                # ky=2, reflected
            t = 0
            for vimg in (v_m1, img, v_p1):                      # ky = 0, 1, 2
                left = _roll_lanes(vimg, 1, HW)                 # col w-1
                right = _roll_lanes(vimg, -1, HW)               # col w+1
                for tap in (jnp.where(col_first, right, left),  # kx = 0
                            vimg,                               # kx = 1
                            jnp.where(col_last, left, right)):  # kx = 2
                    patches_ref[pl.ds(t * Cp, Cp), pl.ds(b * HW, HW)] = tap
                    t += 1
        return patches_ref[...].astype(jnp.bfloat16)            # (9*Cp, B*HW)

    def conv3x3(get_img, w_ref, b_ref):
        p = build_patches(get_img)
        # One fused MXU matmul per conv: bf16 operands, f32 accumulation.
        y = jnp.dot(w_ref[...], p, preferred_element_type=jnp.float32)
        return y + b_ref[...]                                   # broadcast bias add

    def instance_norm(v):
        # InstanceNorm2d(affine=False, track_running_stats=False):
        # per-channel stats over the spatial (lane) axis, fused sum/sum-sq form
        # so both reductions come from one sweep over v.
        inv_hw = jnp.float32(1.0 / HW)
        s1 = jnp.sum(v, axis=1, keepdims=True)
        s2 = jnp.sum(v * v, axis=1, keepdims=True)
        mu = s1 * inv_hw
        var = jnp.maximum(s2 * inv_hw - mu * mu, 0.0)
        return (v - mu) * jax.lax.rsqrt(var + EPS)

    # conv1 -> InstanceNorm -> LeakyReLU(0.15)
    y = conv3x3(lambda b: x_ref[b], w1_ref, b1_ref)             # (Cp, B*HW)
    acts = []
    for b in range(B):
        yb = instance_norm(y[:, b * HW:(b + 1) * HW])
        acts.append(jnp.maximum(yb, NEG_SLOPE * yb))            # one vmax

    # conv2 -> InstanceNorm -> residual add (all f32)
    z = conv3x3(lambda b: acts[b], w2_ref, b2_ref)              # (Cp, B*HW)
    for b in range(B):
        zb = instance_norm(z[:, b * HW:(b + 1) * HW])
        out_ref[b] = (zb + x_ref[b]).astype(out_ref.dtype)


def _pack_conv_params(w_hwio, bias, c_pad):
    """(3,3,C,C) HWIO weights + (C,) bias -> bf16 (Cp, 9*Cp) + f32 (Cp, 1).

    Column (ky*3+kx)*Cp + ci of the weight matrix holds w[ky, kx, ci, :].
    Padded input/output channels are zero, so they stay inert end-to-end.
    """
    kh, kw, cin, cout = w_hwio.shape
    wp = jnp.zeros((kh, kw, c_pad, c_pad), jnp.float32)
    wp = wp.at[:, :, :cin, :cout].set(w_hwio.astype(jnp.float32))
    wmat = jnp.transpose(wp, (3, 0, 1, 2)).reshape(c_pad, kh * kw * c_pad)
    bvec = jnp.zeros((c_pad, 1), jnp.float32).at[:cout, 0].set(bias.astype(jnp.float32))
    return wmat.astype(jnp.bfloat16), bvec


def _imgs_per_step(n, c_pad, hw):
    """Images per grid step: amortize the ~0.35us/step pipeline overhead, keep
    >= 2 parallel grid steps (v7x has 2 TensorCores per chip), and keep the f32
    patch scratch + its bf16 copy + activation temps well inside the scoped
    VMEM budget (the (9*Cp, B*HW) patch matrix is ~9x the activation block and
    dominates; v7x physical VMEM is only 64 MiB)."""
    best = 1
    for b in range(1, n + 1):
        if n % b:
            continue
        if n >= 2 and n // b < 2:
            continue
        if 9 * c_pad * b * hw * 6 > 8 * 1024 * 1024:   # f32 + bf16 patch bytes
            continue
        best = b
    return best


@jax.jit
def resnet_block2(x_nchw, w1, b1, w2, b2):
    """Forward pass of ResnetBlock2.  x_nchw: (N, C, H, W) float32 (PyTorch layout)."""
    N, C, H, W = x_nchw.shape
    assert H >= 2 and W >= 2, "reflection padding of 1 requires H, W >= 2"
    HW = H * W
    Cp = ((C + 7) // 8) * 8          # pad channels to the f32 sublane multiple

    # Free layout work only: reshape + zero channel pad (no transposes, no
    # wrapper-side spatial padding).
    x_flat = x_nchw.reshape(N, C, HW).astype(jnp.float32)
    x_pad = jnp.pad(x_flat, ((0, 0), (0, Cp - C), (0, 0)))

    w1p, b1p = _pack_conv_params(w1, b1, Cp)
    w2p, b2p = _pack_conv_params(w2, b2, Cp)

    B = _imgs_per_step(N, Cp, HW)
    kernel = functools.partial(_resnet_block2_kernel, H=H, W=W, B=B)

    out_pad = pl.pallas_call(
        kernel,
        out_shape=jax.ShapeDtypeStruct((N, Cp, HW), jnp.float32),
        grid_spec=pltpu.PrefetchScalarGridSpec(
            num_scalar_prefetch=0,
            grid=(N // B,),
            in_specs=[
                pl.BlockSpec((B, Cp, HW), lambda i: (i, 0, 0)),
                pl.BlockSpec((Cp, 9 * Cp), lambda i: (0, 0)),
                pl.BlockSpec((Cp, 9 * Cp), lambda i: (0, 0)),
                pl.BlockSpec((Cp, 1), lambda i: (0, 0)),
                pl.BlockSpec((Cp, 1), lambda i: (0, 0)),
            ],
            out_specs=pl.BlockSpec((B, Cp, HW), lambda i: (i, 0, 0)),
            scratch_shapes=[pltpu.VMEM((9 * Cp, B * HW), jnp.float32)],
        ),
        compiler_params=pltpu.CompilerParams(
            dimension_semantics=("parallel",),
            # Plenty at this shape; for production H*W*C re-derive B / the
            # spatial tile so double-buffered in/out blocks + the f32 patch
            # scratch + its bf16 copy stay under ~24-28 MiB on v7x (64 MiB
            # physical VMEM), and use a two-pass InstanceNorm when tiling.
            vmem_limit_bytes=32 * 1024 * 1024,
        ),
    )(x_pad, w1p, w2p, b1p, b2p)

    return out_pad[:, :C, :].reshape(N, C, H, W)


def resnet_block2_reference(x_nchw, w1, b1, w2, b2):
    """Pure-JAX reference with identical semantics (for validation)."""

    def conv(inp, w, b):
        p = jnp.pad(inp, ((0, 0), (0, 0), (1, 1), (1, 1)), mode="reflect")
        y = jax.lax.conv_general_dilated(
            p, w, window_strides=(1, 1), padding="VALID",
            dimension_numbers=("NCHW", "HWIO", "NCHW"),
            precision=jax.lax.Precision.HIGHEST)
        return y + b.reshape(1, -1, 1, 1)

    def inorm(y):
        mu = jnp.mean(y, axis=(2, 3), keepdims=True)
        var = jnp.mean((y - mu) ** 2, axis=(2, 3), keepdims=True)
        return (y - mu) * jax.lax.rsqrt(var + EPS)

    x = x_nchw.astype(jnp.float32)
    y = inorm(conv(x, w1, b1))
    y = jnp.where(y >= 0, y, NEG_SLOPE * y)
    y = inorm(conv(y, w2, b2))
    return y + x


if __name__ == "__main__":
    N, C, H, W = 2, 4, 16, 16   # dim = C = 4

    key = jax.random.PRNGKey(0)
    k_x, k_w1, k_b1, k_w2, k_b2 = jax.random.split(key, 5)

    x = jax.random.normal(k_x, (N, C, H, W), dtype=jnp.float32)
    # Conv2d(dim, dim, 3) parameters, stored in HWIO layout.
    w1 = jax.random.normal(k_w1, (3, 3, C, C), dtype=jnp.float32) * 0.1
    b1 = jax.random.normal(k_b1, (C,), dtype=jnp.float32) * 0.1
    w2 = jax.random.normal(k_w2, (3, 3, C, C), dtype=jnp.float32) * 0.1
    b2 = jax.random.normal(k_b2, (C,), dtype=jnp.float32) * 0.1

    out = jax.block_until_ready(resnet_block2(x, w1, b1, w2, b2))
    ref = jax.block_until_ready(resnet_block2_reference(x, w1, b1, w2, b2))

    assert out.shape == (N, C, H, W), out.shape
    max_err = float(jnp.max(jnp.abs(out - ref)))
    # Kernel uses bf16 MXU operands (f32 accumulation); reference runs at
    # HIGHEST precision, hence the loosened bound.
    assert jnp.allclose(out, ref, atol=3e-2, rtol=3e-2), max_err
    print("KERNEL_OK")
</pallas_src>

<mosaic_0001>
module attributes {stable_mosaic.version = 11 : i64} {
  func.func @_resnet_block2_kernel(%arg0: i32, %arg1: memref<1x8x256xf32, #tpu.memory_space<vmem>>, %arg2: memref<8x72xbf16, #tpu.memory_space<vmem>>, %arg3: memref<8x72xbf16, #tpu.memory_space<vmem>>, %arg4: memref<8x1xf32, #tpu.memory_space<vmem>>, %arg5: memref<8x1xf32, #tpu.memory_space<vmem>>, %arg6: memref<1x8x256xf32, #tpu.memory_space<vmem>>, %arg7: memref<72x256xf32, #tpu.memory_space<vmem>>) attributes {dimension_semantics = [#tpu.dimension_semantics<parallel>], iteration_bounds = array<i64: 2>, scalar_prefetch = 0 : i64, scratch_operands = 1 : i64, tpu.core_type = #tpu.core_type<tc>, window_params = [{transform_indices = @transform_0, window_bounds = array<i64: 1, 8, 256>}, {pipeline_mode = #tpu.pipeline_mode<synchronous>, transform_indices = @transform_1, window_bounds = array<i64: 8, 72>}, {pipeline_mode = #tpu.pipeline_mode<synchronous>, transform_indices = @transform_2, window_bounds = array<i64: 8, 72>}, {pipeline_mode = #tpu.pipeline_mode<synchronous>, transform_indices = @transform_3, window_bounds = array<i64: 8, 1>}, {pipeline_mode = #tpu.pipeline_mode<synchronous>, transform_indices = @transform_4, window_bounds = array<i64: 8, 1>}, {transform_indices = @transform_5, window_bounds = array<i64: 1, 8, 256>}]} {
    %0 = tpu.iota {dimensions = array<i32: 1>} : vector<8x256xi32>
    %c16_i32 = arith.constant 16 : i32
    %c0_i32 = arith.constant 0 : i32
    %1 = arith.cmpi eq, %c16_i32, %c0_i32 : i32
    %c1_i32 = arith.constant 1 : i32
    %2 = arith.select %1, %c1_i32, %c16_i32 : i32
    %3 = vector.broadcast %2 : i32 to vector<8x256xi32>
    %4 = arith.remsi %0, %3 : vector<8x256xi32>
    %c0_i32_0 = arith.constant 0 : i32
    %5 = vector.broadcast %c0_i32_0 : i32 to vector<8x256xi32>
    %6 = arith.cmpi ne, %4, %5 : vector<8x256xi32>
    %c0_i32_1 = arith.constant 0 : i32
    %7 = vector.broadcast %c0_i32_1 : i32 to vector<8x256xi32>
    %8 = arith.cmpi slt, %4, %7 : vector<8x256xi32>
    %c0_i32_2 = arith.constant 0 : i32
    %9 = arith.cmpi slt, %2, %c0_i32_2 : i32
    %10 = vector.broadcast %9 : i1 to vector<8x256xi1>
    %11 = vector.broadcast %10 : vector<8x256xi1> to vector<8x256xi1>
    %12 = arith.xori %8, %11 : vector<8x256xi1>
    %13 = arith.andi %12, %6 : vector<8x256xi1>
    %14 = vector.broadcast %2 : i32 to vector<8x256xi32>
    %15 = arith.addi %4, %14 : vector<8x256xi32>
    %16 = arith.select %13, %15, %4 : vector<8x256xi1>, vector<8x256xi32>
    %c0_i32_3 = arith.constant 0 : i32
    %17 = vector.broadcast %c0_i32_3 : i32 to vector<8x256xi32>
    %18 = arith.cmpi eq, %16, %17 : vector<8x256xi32>
    %c15_i32 = arith.constant 15 : i32
    %19 = vector.broadcast %c15_i32 : i32 to vector<8x256xi32>
    %20 = arith.cmpi eq, %16, %19 : vector<8x256xi32>
    %c16_i32_4 = arith.constant 16 : i32
    %21 = vector.broadcast %c16_i32_4 : i32 to vector<8x256xi32>
    %22 = arith.cmpi slt, %0, %21 : vector<8x256xi32>
    %c240_i32 = arith.constant 240 : i32
    %23 = vector.broadcast %c240_i32 : i32 to vector<8x256xi32>
    %24 = arith.cmpi sge, %0, %23 : vector<8x256xi32>
    %c0 = arith.constant 0 : index
    %c0_5 = arith.constant 0 : index
    %c0_6 = arith.constant 0 : index
    %25 = vector.load %arg1[%c0, %c0_5, %c0_6] : memref<1x8x256xf32, #tpu.memory_space<vmem>>, vector<1x8x256xf32>
    %26 = vector.shape_cast %25 : vector<1x8x256xf32> to vector<8x256xf32>
    %c16_i32_7 = arith.constant 16 : i32
    %27 = tpu.dynamic_rotate %26 by %c16_i32_7 dim 1 : vector<8x256xf32>, i32 -> vector<8x256xf32>
    %c240_i32_8 = arith.constant 240 : i32
    %28 = tpu.dynamic_rotate %26 by %c240_i32_8 dim 1 : vector<8x256xf32>, i32 -> vector<8x256xf32>
    %29 = arith.select %22, %28, %27 : vector<8x256xi1>, vector<8x256xf32>
    %30 = arith.select %24, %27, %28 : vector<8x256xi1>, vector<8x256xf32>
    %c1_i32_9 = arith.constant 1 : i32
    %31 = tpu.dynamic_rotate %29 by %c1_i32_9 dim 1 : vector<8x256xf32>, i32 -> vector<8x256xf32>
    %c255_i32 = arith.constant 255 : i32
    %32 = tpu.dynamic_rotate %29 by %c255_i32 dim 1 : vector<8x256xf32>, i32 -> vector<8x256xf32>
    %33 = arith.select %18, %32, %31 : vector<8x256xi1>, vector<8x256xf32>
    %34 = arith.select %20, %31, %32 : vector<8x256xi1>, vector<8x256xf32>
    %c0_10 = arith.constant 0 : index
    %c0_11 = arith.constant 0 : index
    %35 = vector.load %arg7[%c0_10, %c0_11] : memref<72x256xf32, #tpu.memory_space<vmem>>, vector<8x256xf32>
    tpu.vector_store %arg7[%c0_10, %c0_11], %33 {strides = array<i32>} : memref<72x256xf32, #tpu.memory_space<vmem>>, vector<8x256xf32>,
    %c8 = arith.constant 8 : index
    %c0_12 = arith.constant 0 : index
    %36 = vector.load %arg7[%c8, %c0_12] : memref<72x256xf32, #tpu.memory_space<vmem>>, vector<8x256xf32>
    tpu.vector_store %arg7[%c8, %c0_12], %29 {strides = array<i32>} : memref<72x256xf32, #tpu.memory_space<vmem>>, vector<8x256xf32>,
    %c16 = arith.constant 16 : index
    %c0_13 = arith.constant 0 : index
    %37 = vector.load %arg7[%c16, %c0_13] : memref<72x256xf32, #tpu.memory_space<vmem>>, vector<8x256xf32>
    tpu.vector_store %arg7[%c16, %c0_13], %34 {strides = array<i32>} : memref<72x256xf32, #tpu.memory_space<vmem>>, vector<8x256xf32>,
    %c1_i32_14 = arith.constant 1 : i32
    %38 = tpu.dynamic_rotate %26 by %c1_i32_14 dim 1 : vector<8x256xf32>, i32 -> vector<8x256xf32>
    %c255_i32_15 = arith.constant 255 : i32
    %39 = tpu.dynamic_rotate %26 by %c255_i32_15 dim 1 : vector<8x256xf32>, i32 -> vector<8x256xf32>
    %40 = arith.select %18, %39, %38 : vector<8x256xi1>, vector<8x256xf32>
    %41 = arith.select %20, %38, %39 : vector<8x256xi1>, vector<8x256xf32>
    %c24 = arith.constant 24 : index
    %c0_16 = arith.constant 0 : index
    %42 = vector.load %arg7[%c24, %c0_16] : memref<72x256xf32, #tpu.memory_space<vmem>>, vector<8x256xf32>
    tpu.vector_store %arg7[%c24, %c0_16], %40 {strides = array<i32>} : memref<72x256xf32, #tpu.memory_space<vmem>>, vector<8x256xf32>,
    %c32 = arith.constant 32 : index
    %c0_17 = arith.constant 0 : index
    %43 = vector.load %arg7[%c32, %c0_17] : memref<72x256xf32, #tpu.memory_space<vmem>>, vector<8x256xf32>
    tpu.vector_store %arg7[%c32, %c0_17], %26 {strides = array<i32>} : memref<72x256xf32, #tpu.memory_space<vmem>>, vector<8x256xf32>,
    %c40 = arith.constant 40 : index
    %c0_18 = arith.constant 0 : index
    %44 = vector.load %arg7[%c40, %c0_18] : memref<72x256xf32, #tpu.memory_space<vmem>>, vector<8x256xf32>
    tpu.vector_store %arg7[%c40, %c0_18], %41 {strides = array<i32>} : memref<72x256xf32, #tpu.memory_space<vmem>>, vector<8x256xf32>,
    %c1_i32_19 = arith.constant 1 : i32
    %45 = tpu.dynamic_rotate %30 by %c1_i32_19 dim 1 : vector<8x256xf32>, i32 -> vector<8x256xf32>
    %c255_i32_20 = arith.constant 255 : i32
    %46 = tpu.dynamic_rotate %30 by %c255_i32_20 dim 1 : vector<8x256xf32>, i32 -> vector<8x256xf32>
    %47 = arith.select %18, %46, %45 : vector<8x256xi1>, vector<8x256xf32>
    %48 = arith.select %20, %45, %46 : vector<8x256xi1>, vector<8x256xf32>
    %c48 = arith.constant 48 : index
    %c0_21 = arith.constant 0 : index
    %49 = vector.load %arg7[%c48, %c0_21] : memref<72x256xf32, #tpu.memory_space<vmem>>, vector<8x256xf32>
    tpu.vector_store %arg7[%c48, %c0_21], %47 {strides = array<i32>} : memref<72x256xf32, #tpu.memory_space<vmem>>, vector<8x256xf32>,
    %c56 = arith.constant 56 : index
    %c0_22 = arith.constant 0 : index
    %50 = vector.load %arg7[%c56, %c0_22] : memref<72x256xf32, #tpu.memory_space<vmem>>, vector<8x256xf32>
    tpu.vector_store %arg7[%c56, %c0_22], %30 {strides = array<i32>} : memref<72x256xf32, #tpu.memory_space<vmem>>, vector<8x256xf32>,
    %c64 = arith.constant 64 : index
    %c0_23 = arith.constant 0 : index
    %51 = vector.load %arg7[%c64, %c0_23] : memref<72x256xf32, #tpu.memory_space<vmem>>, vector<8x256xf32>
    tpu.vector_store %arg7[%c64, %c0_23], %48 {strides = array<i32>} : memref<72x256xf32, #tpu.memory_space<vmem>>, vector<8x256xf32>,
    %c0_24 = arith.constant 0 : index
    %c0_25 = arith.constant 0 : index
    %52 = vector.load %arg7[%c0_24, %c0_25] : memref<72x256xf32, #tpu.memory_space<vmem>>, vector<72x256xf32>
    %53 = arith.truncf %52 : vector<72x256xf32> to vector<72x256xbf16>
    %c0_26 = arith.constant 0 : index
    %c0_27 = arith.constant 0 : index
    %54 = vector.load %arg2[%c0_26, %c0_27] : memref<8x72xbf16, #tpu.memory_space<vmem>>, vector<8x72xbf16>
    %cst = arith.constant dense<0.000000e+00> : vector<8x256xf32>
    %55 = tpu.matmul %54, %53, %cst {dimension_numbers = #tpu.dot_dimension_numbers<[1], [0], [0], [1], [0, 0, 1, 1], [], []>} : vector<8x72xbf16>, vector<72x256xbf16>, vector<8x256xf32> -> vector<8x256xf32>
    %c0_28 = arith.constant 0 : index
    %c0_29 = arith.constant 0 : index
    %56 = vector.load %arg4[%c0_28, %c0_29] : memref<8x1xf32, #tpu.memory_space<vmem>>, vector<8x1xf32>
    %57 = vector.broadcast %56 : vector<8x1xf32> to vector<8x256xf32>
    %58 = arith.addf %55, %57 : vector<8x256xf32>
    %cst_30 = arith.constant dense<0.000000e+00> : vector<8xf32>
    %59 = vector.multi_reduction <add>, %58, %cst_30 [1] : vector<8x256xf32> to vector<8xf32>
    %60 = vector.shape_cast %59 : vector<8xf32> to vector<8x1xf32>
    %61 = arith.mulf %58, %58 : vector<8x256xf32>
    %cst_31 = arith.constant dense<0.000000e+00> : vector<8xf32>
    %62 = vector.multi_reduction <add>, %61, %cst_31 [1] : vector<8x256xf32> to vector<8xf32>
    %63 = vector.shape_cast %62 : vector<8xf32> to vector<8x1xf32>
    %cst_32 = arith.constant 3.906250e-03 : f32
    %64 = vector.broadcast %cst_32 : f32 to vector<8x1xf32>
    %65 = arith.mulf %60, %64 : vector<8x1xf32>
    %cst_33 = arith.constant 3.906250e-03 : f32
    %66 = vector.broadcast %cst_33 : f32 to vector<8x1xf32>
    %67 = arith.mulf %63, %66 : vector<8x1xf32>
    %68 = arith.mulf %65, %65 : vector<8x1xf32>
    %69 = arith.subf %67, %68 : vector<8x1xf32>
    %cst_34 = arith.constant 0.000000e+00 : f32
    %70 = vector.broadcast %cst_34 : f32 to vector<8x1xf32>
    %71 = arith.maximumf %69, %70 : vector<8x1xf32>
    %72 = vector.broadcast %65 : vector<8x1xf32> to vector<8x256xf32>
    %73 = arith.subf %58, %72 : vector<8x256xf32>
    %cst_35 = arith.constant 9.99999974E-6 : f32
    %74 = vector.broadcast %cst_35 : f32 to vector<8x1xf32>
    %75 = arith.addf %71, %74 : vector<8x1xf32>
    %76 = math.rsqrt %75 : vector<8x1xf32>
    %77 = vector.broadcast %76 : vector<8x1xf32> to vector<8x256xf32>
    %78 = arith.mulf %73, %77 : vector<8x256xf32>
    %cst_36 = arith.constant 1.500000e-01 : f32
    %79 = vector.broadcast %cst_36 : f32 to vector<8x256xf32>
    %80 = arith.mulf %79, %78 : vector<8x256xf32>
    %81 = arith.maximumf %78, %80 : vector<8x256xf32>
    %c16_i32_37 = arith.constant 16 : i32
    %82 = tpu.dynamic_rotate %81 by %c16_i32_37 dim 1 : vector<8x256xf32>, i32 -> vector<8x256xf32>
    %c240_i32_38 = arith.constant 240 : i32
    %83 = tpu.dynamic_rotate %81 by %c240_i32_38 dim 1 : vector<8x256xf32>, i32 -> vector<8x256xf32>
    %84 = arith.select %22, %83, %82 : vector<8x256xi1>, vector<8x256xf32>
    %85 = arith.select %24, %82, %83 : vector<8x256xi1>, vector<8x256xf32>
    %c1_i32_39 = arith.constant 1 : i32
    %86 = tpu.dynamic_rotate %84 by %c1_i32_39 dim 1 : vector<8x256xf32>, i32 -> vector<8x256xf32>
    %c255_i32_40 = arith.constant 255 : i32
    %87 = tpu.dynamic_rotate %84 by %c255_i32_40 dim 1 : vector<8x256xf32>, i32 -> vector<8x256xf32>
    %88 = arith.select %18, %87, %86 : vector<8x256xi1>, vector<8x256xf32>
    %89 = arith.select %20, %86, %87 : vector<8x256xi1>, vector<8x256xf32>
    %c0_41 = arith.constant 0 : index
    %c0_42 = arith.constant 0 : index
    %90 = vector.load %arg7[%c0_41, %c0_42] : memref<72x256xf32, #tpu.memory_space<vmem>>, vector<8x256xf32>
    tpu.vector_store %arg7[%c0_41, %c0_42], %88 {strides = array<i32>} : memref<72x256xf32, #tpu.memory_space<vmem>>, vector<8x256xf32>,
    %c8_43 = arith.constant 8 : index
    %c0_44 = arith.constant 0 : index
    %91 = vector.load %arg7[%c8_43, %c0_44] : memref<72x256xf32, #tpu.memory_space<vmem>>, vector<8x256xf32>
    tpu.vector_store %arg7[%c8_43, %c0_44], %84 {strides = array<i32>} : memref<72x256xf32, #tpu.memory_space<vmem>>, vector<8x256xf32>,
    %c16_45 = arith.constant 16 : index
    %c0_46 = arith.constant 0 : index
    %92 = vector.load %arg7[%c16_45, %c0_46] : memref<72x256xf32, #tpu.memory_space<vmem>>, vector<8x256xf32>
    tpu.vector_store %arg7[%c16_45, %c0_46], %89 {strides = array<i32>} : memref<72x256xf32, #tpu.memory_space<vmem>>, vector<8x256xf32>,
    %c1_i32_47 = arith.constant 1 : i32
    %93 = tpu.dynamic_rotate %81 by %c1_i32_47 dim 1 : vector<8x256xf32>, i32 -> vector<8x256xf32>
    %c255_i32_48 = arith.constant 255 : i32
    %94 = tpu.dynamic_rotate %81 by %c255_i32_48 dim 1 : vector<8x256xf32>, i32 -> vector<8x256xf32>
    %95 = arith.select %18, %94, %93 : vector<8x256xi1>, vector<8x256xf32>
    %96 = arith.select %20, %93, %94 : vector<8x256xi1>, vector<8x256xf32>
    %c24_49 = arith.constant 24 : index
    %c0_50 = arith.constant 0 : index
    %97 = vector.load %arg7[%c24_49, %c0_50] : memref<72x256xf32, #tpu.memory_space<vmem>>, vector<8x256xf32>
    tpu.vector_store %arg7[%c24_49, %c0_50], %95 {strides = array<i32>} : memref<72x256xf32, #tpu.memory_space<vmem>>, vector<8x256xf32>,
    %c32_51 = arith.constant 32 : index
    %c0_52 = arith.constant 0 : index
    %98 = vector.load %arg7[%c32_51, %c0_52] : memref<72x256xf32, #tpu.memory_space<vmem>>, vector<8x256xf32>
    tpu.vector_store %arg7[%c32_51, %c0_52], %81 {strides = array<i32>} : memref<72x256xf32, #tpu.memory_space<vmem>>, vector<8x256xf32>,
    %c40_53 = arith.constant 40 : index
    %c0_54 = arith.constant 0 : index
    %99 = vector.load %arg7[%c40_53, %c0_54] : memref<72x256xf32, #tpu.memory_space<vmem>>, vector<8x256xf32>
    tpu.vector_store %arg7[%c40_53, %c0_54], %96 {strides = array<i32>} : memref<72x256xf32, #tpu.memory_space<vmem>>, vector<8x256xf32>,
    %c1_i32_55 = arith.constant 1 : i32
    %100 = tpu.dynamic_rotate %85 by %c1_i32_55 dim 1 : vector<8x256xf32>, i32 -> vector<8x256xf32>
    %c255_i32_56 = arith.constant 255 : i32
    %101 = tpu.dynamic_rotate %85 by %c255_i32_56 dim 1 : vector<8x256xf32>, i32 -> vector<8x256xf32>
    %102 = arith.select %18, %101, %100 : vector<8x256xi1>, vector<8x256xf32>
    %103 = arith.select %20, %100, %101 : vector<8x256xi1>, vector<8x256xf32>
    %c48_57 = arith.constant 48 : index
    %c0_58 = arith.constant 0 : index
    %104 = vector.load %arg7[%c48_57, %c0_58] : memref<72x256xf32, #tpu.memory_space<vmem>>, vector<8x256xf32>
    tpu.vector_store %arg7[%c48_57, %c0_58], %102 {strides = array<i32>} : memref<72x256xf32, #tpu.memory_space<vmem>>, vector<8x256xf32>,
    %c56_59 = arith.constant 56 : index
    %c0_60 = arith.constant 0 : index
    %105 = vector.load %arg7[%c56_59, %c0_60] : memref<72x256xf32, #tpu.memory_space<vmem>>, vector<8x256xf32>
    tpu.vector_store %arg7[%c56_59, %c0_60], %85 {strides = array<i32>} : memref<72x256xf32, #tpu.memory_space<vmem>>, vector<8x256xf32>,
    %c64_61 = arith.constant 64 : index
    %c0_62 = arith.constant 0 : index
    %106 = vector.load %arg7[%c64_61, %c0_62] : memref<72x256xf32, #tpu.memory_space<vmem>>, vector<8x256xf32>
    tpu.vector_store %arg7[%c64_61, %c0_62], %103 {strides = array<i32>} : memref<72x256xf32, #tpu.memory_space<vmem>>, vector<8x256xf32>,
    %c0_63 = arith.constant 0 : index
    %c0_64 = arith.constant 0 : index
    %107 = vector.load %arg7[%c0_63, %c0_64] : memref<72x256xf32, #tpu.memory_space<vmem>>, vector<72x256xf32>
    %108 = arith.truncf %107 : vector<72x256xf32> to vector<72x256xbf16>
    %c0_65 = arith.constant 0 : index
    %c0_66 = arith.constant 0 : index
    %109 = vector.load %arg3[%c0_65, %c0_66] : memref<8x72xbf16, #tpu.memory_space<vmem>>, vector<8x72xbf16>
    %cst_67 = arith.constant dense<0.000000e+00> : vector<8x256xf32>
    %110 = tpu.matmul %109, %108, %cst_67 {dimension_numbers = #tpu.dot_dimension_numbers<[1], [0], [0], [1], [0, 0, 1, 1], [], []>} : vector<8x72xbf16>, vector<72x256xbf16>, vector<8x256xf32> -> vector<8x256xf32>
    %c0_68 = arith.constant 0 : index
    %c0_69 = arith.constant 0 : index
    %111 = vector.load %arg5[%c0_68, %c0_69] : memref<8x1xf32, #tpu.memory_space<vmem>>, vector<8x1xf32>
    %112 = vector.broadcast %111 : vector<8x1xf32> to vector<8x256xf32>
    %113 = arith.addf %110, %112 : vector<8x256xf32>
    %cst_70 = arith.constant dense<0.000000e+00> : vector<8xf32>
    %114 = vector.multi_reduction <add>, %113, %cst_70 [1] : vector<8x256xf32> to vector<8xf32>
    %115 = vector.shape_cast %114 : vector<8xf32> to vector<8x1xf32>
    %116 = arith.mulf %113, %113 : vector<8x256xf32>
    %cst_71 = arith.constant dense<0.000000e+00> : vector<8xf32>
    %117 = vector.multi_reduction <add>, %116, %cst_71 [1] : vector<8x256xf32> to vector<8xf32>
    %118 = vector.shape_cast %117 : vector<8xf32> to vector<8x1xf32>
    %cst_72 = arith.constant 3.906250e-03 : f32
    %119 = vector.broadcast %cst_72 : f32 to vector<8x1xf32>
    %120 = arith.mulf %115, %119 : vector<8x1xf32>
    %cst_73 = arith.constant 3.906250e-03 : f32
    %121 = vector.broadcast %cst_73 : f32 to vector<8x1xf32>
    %122 = arith.mulf %118, %121 : vector<8x1xf32>
    %123 = arith.mulf %120, %120 : vector<8x1xf32>
    %124 = arith.subf %122, %123 : vector<8x1xf32>
    %cst_74 = arith.constant 0.000000e+00 : f32
    %125 = vector.broadcast %cst_74 : f32 to vector<8x1xf32>
    %126 = arith.maximumf %124, %125 : vector<8x1xf32>
    %127 = vector.broadcast %120 : vector<8x1xf32> to vector<8x256xf32>
    %128 = arith.subf %113, %127 : vector<8x256xf32>
    %cst_75 = arith.constant 9.99999974E-6 : f32
    %129 = vector.broadcast %cst_75 : f32 to vector<8x1xf32>
    %130 = arith.addf %126, %129 : vector<8x1xf32>
    %131 = math.rsqrt %130 : vector<8x1xf32>
    %132 = vector.broadcast %131 : vector<8x1xf32> to vector<8x256xf32>
    %133 = arith.mulf %128, %132 : vector<8x256xf32>
    %c0_76 = arith.constant 0 : index
    %c0_77 = arith.constant 0 : index
    %c0_78 = arith.constant 0 : index
    %134 = vector.load %arg1[%c0_76, %c0_77, %c0_78] : memref<1x8x256xf32, #tpu.memory_space<vmem>>, vector<1x8x256xf32>
    %135 = vector.shape_cast %134 : vector<1x8x256xf32> to vector<8x256xf32>
    %136 = arith.addf %133, %135 : vector<8x256xf32>
    %c0_79 = arith.constant 0 : index
    %c0_80 = arith.constant 0 : index
    %c0_81 = arith.constant 0 : index
    %137 = vector.load %arg6[%c0_79, %c0_80, %c0_81] : memref<1x8x256xf32, #tpu.memory_space<vmem>>, vector<1x8x256xf32>
    %138 = vector.shape_cast %137 : vector<1x8x256xf32> to vector<8x256xf32>
    %139 = vector.shape_cast %136 : vector<8x256xf32> to vector<1x8x256xf32>
    tpu.vector_store %arg6[%c0_79, %c0_80, %c0_81], %139 {strides = array<i32>} : memref<1x8x256xf32, #tpu.memory_space<vmem>>, vector<1x8x256xf32>,
    return
  }
  func.func @transform_0(%arg0: i32) -> (i32, i32, i32) {
    %c0_i32 = arith.constant 0 : i32
    %c0_i32_0 = arith.constant 0 : i32
    %c0_i32_1 = arith.constant 0 : i32
    return %arg0, %c0_i32, %c0_i32_0 : i32, i32, i32
  }
  func.func @transform_1(%arg0: i32) -> (i32, i32) {
    %c0_i32 = arith.constant 0 : i32
    %c0_i32_0 = arith.constant 0 : i32
    %c0_i32_1 = arith.constant 0 : i32
    return %c0_i32, %c0_i32_0 : i32, i32
  }
  func.func @transform_2(%arg0: i32) -> (i32, i32) {
    %c0_i32 = arith.constant 0 : i32
    %c0_i32_0 = arith.constant 0 : i32
    %c0_i32_1 = arith.constant 0 : i32
    return %c0_i32, %c0_i32_0 : i32, i32
  }
  func.func @transform_3(%arg0: i32) -> (i32, i32) {
    %c0_i32 = arith.constant 0 : i32
    %c0_i32_0 = arith.constant 0 : i32
    %c0_i32_1 = arith.constant 0 : i32
    return %c0_i32, %c0_i32_0 : i32, i32
  }
  func.func @transform_4(%arg0: i32) -> (i32, i32) {
    %c0_i32 = arith.constant 0 : i32
    %c0_i32_0 = arith.constant 0 : i32
    %c0_i32_1 = arith.constant 0 : i32
    return %c0_i32, %c0_i32_0 : i32, i32
  }
  func.func @transform_5(%arg0: i32) -> (i32, i32, i32) {
    %c0_i32 = arith.constant 0 : i32
    %c0_i32_0 = arith.constant 0 : i32
    %c0_i32_1 = arith.constant 0 : i32
    return %arg0, %c0_i32, %c0_i32_0 : i32, i32, i32
  }
}

</mosaic_0001>

<bundles_post_ra>
// kernel: resnet_block2.1
= control target key start
LH: loop header
LB: loop body
LE: loop exit
PB: predicated region body
PF: predicated region fallthrough
CT: control target
= control target key end

     0   :  { %s863_s18 = smov 0   ;;  %s1110_s0 = inlined_call_operand.vmem [shape: f32[2,8,256], index: 0, kind: input, shape index: {}]   ;;  %s1111_s1 = inlined_call_operand.vmem [shape: bf16[8,72], index: 1, kind: input, shape index: {}]   ;;  %s1112_s2 = inlined_call_operand.vmem [shape: bf16[8,72], index: 2, kind: input, shape index: {}]   ;;  %s1113_s3 = inlined_call_operand.vmem [shape: f32[8,1], index: 3, kind: input, shape index: {}]   ;;  %s1114_s4 = inlined_call_operand.vmem [shape: f32[8,1], index: 4, kind: input, shape index: {}]   ;;  %s1115_s5 = inlined_call_operand.vmem [shape: f32[2,8,256], index: 5, kind: output, shape index: {}]  }
   0x1 LB: > { %s705_s19 = sadd.s32 4294967295, %s826_s18   ;;  %p709_p0 = scmp.ge.s32.totalorder %s826_s18, 1  ;;  %s826_s18 = sphi %s863_s18, %s15_s18  }
   0x2   : > { %p187_p1 = scmp.lt.s32.totalorder %s826_s18, 3 }
   0x4   : > { %p188_p2 = pnand %p709_p0, %p187_p1 }
   0x5   : > { %p215_p3 = scmp.lt.s32.totalorder (!%p188_p2), %s705_s19, 1  ;;  %s828_s24 = smov (!%p188_p2), 16  }
   0x6   : > { %191 = sbr.rel (%p188_p2) target bundleno = 1288 (0x508), region = 40  ;;  %s829_s25 = smov (!%p188_p2), 112  }
   0x7   : > { %s830_s26 = smov (!%p188_p2), 1   ;;  %s831_s27 = smov (!%p188_p2), 127  }
   0xb   : > { %s1125_s19 = smov (!%p215_p3, %s705_s19), 1  ;;  %v226_v3 = vlaneseq  ;;  %v832_v20 = vmov 0   ;;  %v377_v21 = vld [vmem:[%s1113_s3] sm:$0xff]  ;;  %vm387_vm8 = vcmask 1043456   ;;  %vm383_vm10 = vcmask 588800  }
   0xc   : > { %s720_s20 = sshll.u32 %s1125_s19, 4  ;;  %426 = vmatprep.mubr.bf16.mxu0 %v832_v20  ;;  %775 = vset.pattern.permute.xlu0 %v832_v20  ;;  %v568_v26 = vld [vmem:[%s1112_s2] sm:$0xf] }
   0xd   : > { %s219_s23 = scalar_lea.vmem %s1110_s0, %s720_s20  ;;  %v888_v4 = vand.u32 127, %v226_v3  ;;  %616 = vmatprep.mubr.bf16.mxu1 %v832_v20  ;;  %s224_s13 = scalar_lea.vmem %s1115_s5, %s720_s20 }
   0xe   : > { %v879_v0 = vld [vmem:[%s219_s23] sm:$0xff]  ;;  %v881_v1 = vld [vmem:[%s219_s23 + $0x8] sm:$0xff] }
   0xf   : > { %v735_v2 = vpack.i.bf16 %v881_v1, %v879_v0  ;;  %v891_v6 = vadd.s32 128, %v888_v4  ;;  %vm257_vm0 = vcmp.lt.s32.totalorder %v888_v4, 16  ;;  %vm273_vm1 = vcmp.lt.s32.totalorder %v888_v4, 112 }
  0x10   : > { %v233_v25 = vand.u32 15, %v888_v4  ;;  %vm284_vm4 = vcmp.lt.s32.totalorder %v888_v4, 1  ;;  %vm291_vm5 = vcmp.lt.s32.totalorder %v888_v4, 127 }
  0x11   : > { %736 = vrot.lane.b32.xlu0 %v735_v2, %s828_s24  ;;  %vm260_vm2 = vcmp.ge.s32.totalorder %v891_v6, 240  ;;  %v240_v22 = vand.u32 15, %v891_v6 }
  0x12   : > { %vm939_vm7 = vcmp.eq.s32.totalorder %v233_v25, 15  ;;  %vm943_vm9 = vcmp.eq.s32.totalorder %v233_v25, 0 }
  0x13   : > { %vm929_vm3 = vcmp.eq.s32.totalorder %v240_v22, 0  ;;  %vm935_vm6 = vcmp.eq.s32.totalorder %v240_v22, 15 }
  0x15   : > { %741 = vrot.lane.b32.xlu0 %v735_v2, %s829_s25 }
  0x19   : > { %756 = vrot.lane.b32.xlu0 %v735_v2, %s830_s26 }
  0x83   : > { %v737_v5 = vpop.permute.xlu0 %736 }
  0x84   : > { %v739_v7 = vunpack.i.h.bf16 %v737_v5  ;;  %v738_v8 = vunpack.i.l.bf16 %v737_v5 }
  0x86   : > { %v898_v12 = vsel %vm257_vm0, %v738_v8, %v739_v7  ;;  %v268_v13 = vsel %vm257_vm0, %v739_v7, %v738_v8 }
  0x87   : > { %v742_v9 = vpop.permute.xlu0 %741 }
  0x88   : > { %v744_v10 = vunpack.i.h.bf16 %v742_v9  ;;  %v743_v11 = vunpack.i.l.bf16 %v742_v9 }
  0x8a   : > { %v904_v14 = vsel %vm273_vm1, %v743_v11, %v744_v10  ;;  %v275_v15 = vsel %vm273_vm1, %v744_v10, %v743_v11 }
  0x8b   : > { %v911_v16 = vsel %vm257_vm0, %v904_v14, %v268_v13  ;;  %v279_v17 = vsel %vm260_vm2, %v898_v12, %v275_v15  ;;  %v757_v24 = vpop.permute.xlu0 %756 }
  0x8c   : > { %v765_v18 = vpack.i.bf16 %v898_v12, %v911_v16  ;;  %v745_v19 = vpack.i.bf16 %v279_v17, %v904_v14  ;;  %v759_v29 = vunpack.i.h.bf16 %v757_v24  ;;  %v758_v30 = vunpack.i.l.bf16 %v757_v24 }
  0x8e   : > { %766 = vrot.lane.b32.xlu0 %v765_v18, %s830_s26  ;;  %746 = vrot.lane.b32.xlu1 %v745_v19, %s830_s26  ;;  %v308_v42 = vsel %vm284_vm4, %v758_v30, %v759_v29  ;;  %v309_v51 = vsel %vm284_vm4, %v759_v29, %v758_v30 }
  0x92   : > { %751 = vrot.lane.b32.xlu1 %v745_v19, %s831_s27  ;;  %380 = vperm.xlu0 %775, %v377_v21  }
  0x96   : > { %761 = vrot.lane.b32.xlu1 %v735_v2, %s831_s27 }
  0x9a   : > { %771 = vrot.lane.b32.xlu1 %v765_v18, %s831_s27 }
 0x100   : > { %v747_v23 = vpop.permute.xlu1 %746  ;;  %v767_v37 = vpop.permute.xlu0 %766 }
 0x101   : > { %v749_v27 = vunpack.i.h.bf16 %v747_v23  ;;  %v748_v28 = vunpack.i.l.bf16 %v747_v23  ;;  %v769_v52 = vunpack.i.h.bf16 %v767_v37  ;;  %v768_v53 = vunpack.i.l.bf16 %v767_v37  ;;  %v376_v23 = vld [vmem:[%s1111_s1] sm:$0xf] }
 0x103   : > { %v330_v38 = vsel %vm284_vm4, %v748_v28, %v749_v27  ;;  %v331_v40 = vsel %vm284_vm4, %v749_v27, %v748_v28  ;;  %v285_v5 = vsel %vm284_vm4, %v768_v53, %v769_v52  ;;  %v286_v13 = vsel %vm284_vm4, %v769_v52, %v768_v53 }
 0x104   : > { %v752_v31 = vpop.permute.xlu1 %751 }
 0x105   : > { %v754_v32 = vunpack.i.h.bf16 %v752_v31  ;;  %v753_v33 = vunpack.i.l.bf16 %v752_v31 }
 0x107   : > { %v337_v39 = vsel %vm291_vm5, %v754_v32, %v753_v33  ;;  %v336_v41 = vsel %vm291_vm5, %v753_v33, %v754_v32 }
 0x108   : > { %v762_v43 = vpop.permute.xlu1 %761  ;;  %v341_v44 = vsel %vm935_vm6, %v330_v38, %v337_v39  ;;  %v340_v45 = vsel %vm939_vm7, %v331_v40, %v336_v41  ;;  %v339_v46 = vsel %vm929_vm3, %v337_v39, %v330_v38  ;;  %v338_v54 = vsel %vm943_vm9, %v336_v41, %v331_v40 }
 0x109   : > { %v764_v47 = vunpack.i.h.bf16 %v762_v43  ;;  %v763_v48 = vunpack.i.l.bf16 %v762_v43  ;;  %v375_v49 = vpack.c.bf16 %v341_v44, %v341_v44  ;;  %v374_v50 = vpack.c.bf16 %v340_v45, %v340_v45 }
 0x10a   : > { %v373_v58 = vpack.c.bf16 %v279_v17, %v339_v46  ;;  %v372_v3 = vpack.c.bf16 %v904_v14, %v338_v54 }
 0x10b   : > { %v314_v55 = vsel %vm291_vm5, %v763_v48, %v764_v47  ;;  %v315_v56 = vsel %vm291_vm5, %v764_v47, %v763_v48  ;;  %714 = vmatprep.subr.msk.bf16.mxu0 %vm387_vm8, %v375_v49  ;;  %v389_v57 = vsel %vm387_vm8, %v374_v50, 0 }
 0x10c   : > { %v772_v59 = vpop.permute.xlu1 %771  ;;  %401 = vmatpush1.bf16.msra.mxu0 %v389_v57  ;;  %v319_v60 = vsel %vm935_vm6, %v308_v42, %v315_v56  ;;  %v318_v2 = vsel %vm939_vm7, %v309_v51, %v314_v55  ;;  %v317_v11 = vsel %vm929_vm3, %v315_v56, %v308_v42  ;;  %v316_v17 = vsel %vm943_vm9, %v314_v55, %v309_v51 }
 0x10d   : > { %v774_v61 = vunpack.i.h.bf16 %v772_v59  ;;  %v773_v62 = vunpack.i.l.bf16 %v772_v59  ;;  %402 = vmatprep.subr.bf16.mxu0 %v373_v58  ;;  %v371_v63 = vpack.c.bf16 %v319_v60, %v881_v1  ;;  %v370_v9 = vpack.c.bf16 %v318_v2, %v879_v0  ;;  %v381_v24 = vpop.permute.xlu0 %380 }
 0x10f   : > { %v293_v7 = vsel %vm291_vm5, %v774_v61, %v773_v62  ;;  %v292_v8 = vsel %vm291_vm5, %v773_v62, %v774_v61 }
 0x110   : > { %403 = vmatpush1.bf16.msra.mxu0 %v372_v3  ;;  %v297_v10 = vsel %vm935_vm6, %v285_v5, %v293_v7  ;;  %v296_v15 = vsel %vm939_vm7, %v286_v13, %v292_v8  ;;  %v295_v18 = vsel %vm929_vm3, %v293_v7, %v285_v5  ;;  %v294_v21 = vsel %vm943_vm9, %v292_v8, %v286_v13 }
 0x111   : > { %404 = vmatprep.subr.bf16.mxu0 %v371_v63  ;;  %v369_v14 = vpack.c.bf16 %v317_v11, %v297_v10  ;;  %v368_v19 = vpack.c.bf16 %v316_v17, %v296_v15  ;;  %v367_v20 = vpack.c.bf16 %v898_v12, %v295_v18  ;;  %v366_v22 = vpack.c.bf16 %v911_v16, %v294_v21 }
 0x114   : > { %405 = vmatpush1.bf16.msra.mxu0 %v370_v9  ;;  %v569_v9 = vld [vmem:[%s1114_s4] sm:$0xff] }
 0x115   : > { %406 = vmatprep.subr.bf16.mxu0 %v369_v14 }
 0x118   : > { %407 = vmatpush1.bf16.msra.mxu0 %v368_v19 }
 0x119   : > { %408 = vmatprep.subr.bf16.mxu0 %v367_v20 }
 0x11c   : > { %409 = vmatpush1.bf16.msra.mxu0 %v366_v22 }
 0x11f   : > { %715 = vmatmul.mubr.msk.bf16.vlgmr.msra.gmra.mxu0 %vm383_vm10, %v376_v23 }
 0x1df   : > { %v428_v25 = vpop.f32.mrf.mxu0 }
 0x1e0   : > { %v429_v27 = vadd.f32 %v428_v25, %v381_v24 }
 0x1e1   : > { %v430_v28 = vpop.f32.mrf.mxu0 }
 0x1e2   : > { %v431_v12 = vadd.f32 %v430_v28, %v381_v24  ;;  %v438_v31 = vmul.f32 %v429_v27, %v429_v27 }
 0x1e3   : > { %v432_v29 = vpop.f32.mrf.mxu0 }
 0x1e4   : > { %v435_v30 = vadd.f32 %v431_v12, %v429_v27  ;;  %v439_v32 = vmul.f32 %v431_v12, %v431_v12 }
 0x1e5   : > { %v433_v33 = vpop.f32.mrf.mxu0 }
 0x1e6   : > { %436 = vadd.xlane.f32.xlu1 %v435_v30  ;;  %v440_v16 = vadd.f32 %v439_v32, %v438_v31 }
 0x1e8   : > { %441 = vadd.xlane.f32.xlu0 %v440_v16 }
 0x26f   : > { %v437_v37 = vpop.xlane.xlu1 %436 }
 0x270   : > { %v443_v38 = vmul.f32 0.00390625, %v437_v37 }
 0x271   : > { %v442_v39 = vpop.xlane.xlu0 %441 }
 0x272   : > { %v444_v40 = vmul.f32 0.00390625, %v442_v39  ;;  %v445_v41 = vmul.f32 %v443_v38, %v443_v38  ;;  %v448_v45 = vsub.f32 %v429_v27, %v443_v38  ;;  %v449_v46 = vsub.f32 %v431_v12, %v443_v38 }
 0x274   : > { %v446_v42 = vsub.f32 %v444_v40, %v445_v41 }
 0x276   : > { %v447_v43 = vmax.f32 %v446_v42, 0.0 }
 0x278   : > { %v450_v44 = vadd.f32 1e-05, %v447_v43 }
 0x27a   : > { %816 = vrsqrt.f32 %v450_v44 }
 0x287   : > { %v817_v47 = vpop.eup %816 }
 0x288   : > { %v452_v48 = vmul.f32 %v817_v47, %v448_v45  ;;  %v453_v49 = vmul.f32 %v817_v47, %v449_v46 }
 0x28a   : > { %v454_v50 = vmul.f32 0.15, %v452_v48  ;;  %v455_v51 = vmul.f32 0.15, %v453_v49 }
 0x28c   : > { %v1006_v52 = vmax.f32 %v452_v48, %v454_v50  ;;  %v1008_v53 = vmax.f32 %v453_v49, %v455_v51 }
 0x28e   : > { %v781_v54 = vpack.i.bf16 %v1008_v53, %v1006_v52 }
 0x290   : > { %782 = vrot.lane.b32.xlu0 %v781_v54, %s829_s25  ;;  %777 = vrot.lane.b32.xlu1 %v781_v54, %s828_s24 }
 0x294   : > { %797 = vrot.lane.b32.xlu0 %v781_v54, %s830_s26 }
 0x302   : > { %v783_v55 = vpop.permute.xlu0 %782  ;;  %v778_v56 = vpop.permute.xlu1 %777 }
 0x303   : > { %v785_v57 = vunpack.i.h.bf16 %v783_v55  ;;  %v784_v58 = vunpack.i.l.bf16 %v783_v55  ;;  %v780_v59 = vunpack.i.h.bf16 %v778_v56  ;;  %v779_v60 = vunpack.i.l.bf16 %v778_v56 }
 0x305   : > { %v468_v61 = vsel %vm273_vm1, %v784_v58, %v785_v57  ;;  %v469_v62 = vsel %vm273_vm1, %v785_v57, %v784_v58  ;;  %v1021_v63 = vsel %vm257_vm0, %v779_v60, %v780_v59  ;;  %v463_v2 = vsel %vm257_vm0, %v780_v59, %v779_v60 }
 0x306   : > { %v1027_v3 = vsel %vm257_vm0, %v468_v61, %v463_v2  ;;  %v473_v5 = vsel %vm260_vm2, %v1021_v63, %v469_v62  ;;  %v798_v10 = vpop.permute.xlu0 %797 }
 0x307   : > { %v806_v7 = vpack.i.bf16 %v1021_v63, %v1027_v3  ;;  %v786_v8 = vpack.i.bf16 %v473_v5, %v468_v61  ;;  %v800_v18 = vunpack.i.h.bf16 %v798_v10  ;;  %v799_v19 = vunpack.i.l.bf16 %v798_v10 }
 0x309   : > { %807 = vrot.lane.b32.xlu0 %v806_v7, %s830_s26  ;;  %787 = vrot.lane.b32.xlu1 %v786_v8, %s830_s26  ;;  %v500_v33 = vsel %vm284_vm4, %v799_v19, %v800_v18  ;;  %v501_v47 = vsel %vm284_vm4, %v800_v18, %v799_v19 }
 0x30d   : > { %572 = vperm.xlu0 %775, %v569_v9   ;;  %792 = vrot.lane.b32.xlu1 %v786_v8, %s831_s27 }
 0x311   : > { %802 = vrot.lane.b32.xlu1 %v781_v54, %s831_s27 }
 0x315   : > { %812 = vrot.lane.b32.xlu1 %v806_v7, %s831_s27 }
 0x37b   : > { %v788_v6 = vpop.permute.xlu1 %787  ;;  %v808_v20 = vpop.permute.xlu0 %807 }
 0x37c   : > { %v790_v11 = vunpack.i.h.bf16 %v788_v6  ;;  %v789_v13 = vunpack.i.l.bf16 %v788_v6  ;;  %v810_v16 = vunpack.i.h.bf16 %v808_v20  ;;  %v809_v37 = vunpack.i.l.bf16 %v808_v20 }
 0x37e   : > { %v522_v21 = vsel %vm284_vm4, %v789_v13, %v790_v11  ;;  %v523_v23 = vsel %vm284_vm4, %v790_v11, %v789_v13  ;;  %v478_v49 = vsel %vm284_vm4, %v809_v37, %v810_v16  ;;  %v479_v57 = vsel %vm284_vm4, %v810_v16, %v809_v37 }
 0x37f   : > { %v793_v14 = vpop.permute.xlu1 %792 }
 0x380   : > { %v795_v15 = vunpack.i.h.bf16 %v793_v14  ;;  %v794_v17 = vunpack.i.l.bf16 %v793_v14 }
 0x382   : > { %v529_v22 = vsel %vm291_vm5, %v795_v15, %v794_v17  ;;  %v528_v24 = vsel %vm291_vm5, %v794_v17, %v795_v15 }
 0x383   : > { %v803_v25 = vpop.permute.xlu1 %802  ;;  %v533_v27 = vsel %vm935_vm6, %v522_v21, %v529_v22  ;;  %v532_v28 = vsel %vm939_vm7, %v523_v23, %v528_v24  ;;  %v531_v12 = vsel %vm929_vm3, %v529_v22, %v522_v21  ;;  %v530_v41 = vsel %vm943_vm9, %v528_v24, %v523_v23 }
 0x384   : > { %v805_v29 = vunpack.i.h.bf16 %v803_v25  ;;  %v804_v30 = vunpack.i.l.bf16 %v803_v25  ;;  %v567_v31 = vpack.c.bf16 %v533_v27, %v533_v27  ;;  %v566_v32 = vpack.c.bf16 %v532_v28, %v532_v28 }
 0x385   : > { %v565_v40 = vpack.c.bf16 %v473_v5, %v531_v12  ;;  %v564_v48 = vpack.c.bf16 %v468_v61, %v530_v41 }
 0x386   : > { %v507_v38 = vsel %vm291_vm5, %v805_v29, %v804_v30  ;;  %716 = vmatprep.subr.msk.bf16.mxu1 %vm387_vm8, %v567_v31  ;;  %v579_v39 = vsel %vm387_vm8, %v566_v32, 0  ;;  %v506_v42 = vsel %vm291_vm5, %v804_v30, %v805_v29 }
 0x387   : > { %v813_v43 = vpop.permute.xlu1 %812  ;;  %591 = vmatpush1.bf16.msra.mxu1 %v579_v39  ;;  %v511_v44 = vsel %vm935_vm6, %v500_v33, %v507_v38  ;;  %v510_v54 = vsel %vm939_vm7, %v501_v47, %v506_v42  ;;  %v509_v59 = vsel %vm929_vm3, %v507_v38, %v500_v33  ;;  %v508_v34 = vsel %vm943_vm9, %v506_v42, %v501_v47 }
 0x388   : > { %v815_v45 = vunpack.i.h.bf16 %v813_v43  ;;  %v814_v46 = vunpack.i.l.bf16 %v813_v43  ;;  %592 = vmatprep.subr.bf16.mxu1 %v565_v40  ;;  %v563_v51 = vpack.c.bf16 %v511_v44, %v1008_v53  ;;  %v562_v58 = vpack.c.bf16 %v510_v54, %v1006_v52  ;;  %v573_v35 = vpop.permute.xlu0 %572 }
 0x38a   : > { %v485_v50 = vsel %vm291_vm5, %v815_v45, %v814_v46  ;;  %v484_v55 = vsel %vm291_vm5, %v814_v46, %v815_v45 }
 0x38b   : > { %593 = vmatpush1.bf16.msra.mxu1 %v564_v48  ;;  %v489_v56 = vsel %vm935_vm6, %v478_v49, %v485_v50  ;;  %v488_v60 = vsel %vm939_vm7, %v479_v57, %v484_v55  ;;  %v487_v61 = vsel %vm929_vm3, %v485_v50, %v478_v49  ;;  %v486_v52 = vsel %vm943_vm9, %v484_v55, %v479_v57 }
 0x38c   : > { %594 = vmatprep.subr.bf16.mxu1 %v563_v51  ;;  %v561_v53 = vpack.c.bf16 %v509_v59, %v489_v56  ;;  %v560_v62 = vpack.c.bf16 %v508_v34, %v488_v60  ;;  %v559_v4 = vpack.c.bf16 %v1021_v63, %v487_v61  ;;  %v558_v2 = vpack.c.bf16 %v1027_v3, %v486_v52 }
 0x38f   : > { %595 = vmatpush1.bf16.msra.mxu1 %v562_v58 }
 0x390   : > { %596 = vmatprep.subr.bf16.mxu1 %v561_v53 }
 0x393   : > { %597 = vmatpush1.bf16.msra.mxu1 %v560_v62 }
 0x394   : > { %598 = vmatprep.subr.bf16.mxu1 %v559_v4 }
 0x397   : > { %599 = vmatpush1.bf16.msra.mxu1 %v558_v2 }
 0x39a   : > { %717 = vmatmul.mubr.msk.bf16.vlgmr.msra.gmra.mxu1 %vm383_vm10, %v568_v26 }
 0x45a   : > { %v618_v5 = vpop.f32.mrf.mxu1 }
 0x45b   : > { %v619_v7 = vadd.f32 %v618_v5, %v573_v35 }
 0x45c   : > { %v620_v8 = vpop.f32.mrf.mxu1 }
 0x45d   : > { %v621_v9 = vadd.f32 %v620_v8, %v573_v35  ;;  %v628_v36 = vmul.f32 %v619_v7, %v619_v7 }
 0x45e   : > { %v622_v63 = vpop.f32.mrf.mxu1 }
 0x45f   : > { %v625_v6 = vadd.f32 %v621_v9, %v619_v7  ;;  %v629_v10 = vmul.f32 %v621_v9, %v621_v9 }
 0x460   : > { %v623_v11 = vpop.f32.mrf.mxu1 }
 0x461   : > { %626 = vadd.xlane.f32.xlu1 %v625_v6  ;;  %v630_v13 = vadd.f32 %v629_v10, %v628_v36 }
 0x463   : > { %631 = vadd.xlane.f32.xlu0 %v630_v13 }
 0x4ea   : > { %v627_v3 = vpop.xlane.xlu1 %626 }
 0x4eb   : > { %v633_v14 = vmul.f32 0.00390625, %v627_v3 }
 0x4ec   : > { %v632_v15 = vpop.xlane.xlu0 %631 }
 0x4ed   : > { %v634_v17 = vmul.f32 0.00390625, %v632_v15  ;;  %v635_v18 = vmul.f32 %v633_v14, %v633_v14  ;;  %v638_v22 = vsub.f32 %v619_v7, %v633_v14  ;;  %v639_v23 = vsub.f32 %v621_v9, %v633_v14 }
 0x4ef   : > { %v636_v19 = vsub.f32 %v634_v17, %v635_v18 }
 0x4f1   : > { %v637_v20 = vmax.f32 %v636_v19, 0.0 }
 0x4f3   : > { %v640_v21 = vadd.f32 1e-05, %v637_v20 }
 0x4f5   : > { %818 = vrsqrt.f32 %v640_v21 }
 0x502   : > { %v819_v24 = vpop.eup %818 }
 0x503   : > { %v642_v25 = vmul.f32 %v819_v24, %v638_v22  ;;  %v643_v27 = vmul.f32 %v819_v24, %v639_v23 }
 0x505   : > { %v646_v28 = vadd.f32 %v642_v25, %v879_v0  ;;  %v647_v12 = vadd.f32 %v643_v27, %v881_v1 }
 0x507   : > { %648 = vst [vmem:[%s224_s13] sm:$0xff] %v646_v28  ;;  %649 = vst [vmem:[%s224_s13 + $0x8] sm:$0xff] %v647_v12 }
 0x508 PF: > { %s15_s18 = sadd.s32 1, %s826_s18  }
 0x509   : > { %p12_p4 = scmp.ge.s32.totalorder %s15_s18, 4  }
 0x50b   :  { %14 = sbr.rel (!%p12_p4) target bundleno = 1 (0x1), region = 70 }

</bundles_post_ra>
